<compile_context>
chip_gen: v6e
topology: v6e:2x2x1
jax: 0.10.0
libtpu: 0.0.40
codegen_flags: <defaults>
</compile_context>

<pallas_src>
import functools

import numpy as np
import jax
import jax.numpy as jnp
from jax import lax
from jax.experimental import pallas as pl
from jax.experimental.pallas import tpu as pltpu

F32 = jnp.float32
BF16 = jnp.bfloat16


# ------------------------------------------------------------------
# Helpers: row tiling, compiler params, single-buffered constant specs
# ------------------------------------------------------------------

def _row_tile(n_rows, bytes_per_row, budget=12 << 20):
    """Pick a row-block size from a VMEM traffic budget (multiple of 16)."""
    if n_rows <= 1024:
        return n_rows                       # full dim is always a legal block
    r = min(1024, max(16, (budget // max(bytes_per_row, 1)) // 16 * 16))
    return min(r, n_rows)


def _cparams(vmem_est, semantics=("parallel",)):
    return pltpu.CompilerParams(
        dimension_semantics=semantics,
        vmem_limit_bytes=int(min(max(vmem_est, 32 << 20), 56 << 20)))


def _const_spec(shape):
    """BlockSpec for a grid-invariant block; single-buffered when supported."""
    index_map = lambda i: (0,) * len(shape)
    try:
        return pl.BlockSpec(shape, index_map, pipeline_mode=pl.Buffered(1))
    except (TypeError, AttributeError):
        return pl.BlockSpec(shape, index_map)


# ------------------------------------------------------------------
# Kernel 1: fused Q/K/V projections + router (softmax, top-k, routing slab,
#           per-tile balance-loss partial sums)
# ------------------------------------------------------------------

def _qkv_router_kernel(*refs, n_selected, n_shared, kq_same, n_rows, row_block):
    if kq_same:
        (q_ref, v_ref, r_ref,
         wq_ref, bq_ref, wv_ref, bv_ref, wg_ref,
         qp_ref, vp_ref, routing_ref, stats_ref) = refs
    else:
        (q_ref, k_ref, v_ref, r_ref,
         wq_ref, bq_ref, wk_ref, bk_ref, wv_ref, bv_ref, wg_ref,
         qp_ref, kp_ref, vp_ref, routing_ref, stats_ref) = refs

    # Projections: bf16 operands, f32 accumulation, stored bf16.
    qp = jnp.dot(q_ref[...], wq_ref[...], preferred_element_type=F32) + bq_ref[...]
    qp_ref[...] = qp.astype(qp_ref.dtype)
    if not kq_same:
        kp = jnp.dot(k_ref[...], wk_ref[...], preferred_element_type=F32) + bk_ref[...]
        kp_ref[...] = kp.astype(kp_ref.dtype)
    vp = jnp.dot(v_ref[...], wv_ref[...], preferred_element_type=F32) + bv_ref[...]
    vp_ref[...] = vp.astype(vp_ref.dtype)

    # Router logits / softmax in f32.  Mask rows beyond n_rows (padded last tile)
    # so garbage never reaches the balance-loss sums.
    logits = jnp.dot(r_ref[...], wg_ref[...], preferred_element_type=F32)
    n, nd = logits.shape
    base = pl.program_id(0) * row_block
    rows = base + lax.broadcasted_iota(jnp.int32, (n, 1), 0)
    valid = rows < n_rows
    logits = jnp.where(valid, logits, 0.0)

    m = jnp.max(logits, axis=-1, keepdims=True)
    e = jnp.exp(logits - m)
    gates = e / jnp.sum(e, axis=-1, keepdims=True)

    # top-k via iterative argmax (lowest index wins ties, like torch.topk)
    col = lax.broadcasted_iota(jnp.int32, (n, nd), 1)
    work = gates
    sel = jnp.zeros_like(gates)
    for _ in range(n_selected):
        mx = jnp.max(work, axis=-1, keepdims=True)
        cand = jnp.where(work == mx, col, nd)
        idx = jnp.min(cand, axis=-1, keepdims=True)
        onehot = (col == idx).astype(F32)
        sel = sel + onehot
        work = jnp.where(onehot > 0, -1e30, work)

    vmask = valid.astype(F32)
    gsum = jnp.sum(gates * vmask, axis=0, keepdims=True)   # (1, nd)
    ssum = jnp.sum(sel * vmask, axis=0, keepdims=True)     # (1, nd)
    stats_ref[0] = jnp.concatenate([gsum, ssum], axis=0)   # (2, nd)

    dyn = gates * sel
    if n_shared > 0:
        routing_ref[...] = jnp.concatenate(
            [jnp.ones((n, n_shared), F32), dyn], axis=-1)
    else:
        routing_ref[...] = dyn


def qkv_router(q_bf, k_bf, v_bf, r_bf, params, cfg):
    N, D = q_bf.shape
    h = cfg["n_heads"]
    hs = cfg["n_shared_heads"]
    nd = h - hs
    nsel = cfg["n_selected_heads"]
    kq_same = cfg["kq_same"]

    wq = params["wq"].astype(BF16)
    bq = params["bq"].reshape(1, D).astype(F32)
    wv = params["wv"].astype(BF16)
    bv = params["bv"].reshape(1, D).astype(F32)
    wg = params["wg"].astype(BF16)

    n_row_ops = (3 + 2) if kq_same else (4 + 3)            # bf16 row ins + outs
    bpr = 2 * (n_row_ops * D * 2 + h * 4)                   # double-buffered rows
    R = _row_tile(N, bpr)
    T = pl.cdiv(N, R)

    row_io = pl.BlockSpec((R, D), lambda i: (i, 0))
    row_h = pl.BlockSpec((R, h), lambda i: (i, 0))
    stats_spec = pl.BlockSpec((1, 2, nd), lambda i: (i, 0, 0))
    w_spec = _const_spec((D, D))
    b_spec = _const_spec((1, D))
    wg_spec = _const_spec((D, nd))

    if kq_same:
        ins = [q_bf, v_bf, r_bf, wq, bq, wv, bv, wg]
        in_specs = [row_io, row_io, row_io, w_spec, b_spec, w_spec, b_spec, wg_spec]
        out_shapes = (jax.ShapeDtypeStruct((N, D), BF16),
                      jax.ShapeDtypeStruct((N, D), BF16),
                      jax.ShapeDtypeStruct((N, h), F32),
                      jax.ShapeDtypeStruct((T, 2, nd), F32))
        out_specs = (row_io, row_io, row_h, stats_spec)
        n_weight = 2
    else:
        wk = params["wk"].astype(BF16)
        bk = params["bk"].reshape(1, D).astype(F32)
        ins = [q_bf, k_bf, v_bf, r_bf, wq, bq, wk, bk, wv, bv, wg]
        in_specs = [row_io, row_io, row_io, row_io,
                    w_spec, b_spec, w_spec, b_spec, w_spec, b_spec, wg_spec]
        out_shapes = (jax.ShapeDtypeStruct((N, D), BF16),
                      jax.ShapeDtypeStruct((N, D), BF16),
                      jax.ShapeDtypeStruct((N, D), BF16),
                      jax.ShapeDtypeStruct((N, h), F32),
                      jax.ShapeDtypeStruct((T, 2, nd), F32))
        out_specs = (row_io, row_io, row_io, row_h, stats_spec)
        n_weight = 3

    est = n_weight * D * D * 2 + D * nd * 2 + R * bpr + 4 * R * D * 4 + (4 << 20)

    outs = pl.pallas_call(
        functools.partial(_qkv_router_kernel, n_selected=nsel, n_shared=hs,
                          kq_same=kq_same, n_rows=N, row_block=R),
        grid=(T,),
        in_specs=in_specs,
        out_specs=out_specs,
        out_shape=out_shapes,
        compiler_params=_cparams(est),
    )(*ins)

    if kq_same:
        qp, vp, routing, stats = outs
        kp = qp
    else:
        qp, kp, vp, routing, stats = outs
    return qp, kp, vp, routing, stats


# ------------------------------------------------------------------
# Kernel 2: MoH attention — lane-dense (1, S, D) blocks, static head loop
# ------------------------------------------------------------------

def _moh_attn_kernel(q_ref, k_ref, v_ref, r_ref, o_ref, *,
                     n_heads, d_k, causal_offset, zero_pad, scale):
    q = q_ref[0]          # (S, D) bf16
    k = k_ref[0]
    v = v_ref[0]
    r = r_ref[0]          # (S, h) f32
    S = q.shape[0]

    # Mask from a single 2-D iota pair, shared by all heads.
    row = lax.broadcasted_iota(jnp.int32, (S, S), 0)
    col = lax.broadcasted_iota(jnp.int32, (S, S), 1)
    allowed = col <= (row - causal_offset)
    first_row = row == 0

    ctx_parts = []
    for hh in range(n_heads):
        sl = slice(hh * d_k, (hh + 1) * d_k)
        s = lax.dot_general(q[:, sl], k[:, sl],
                            dimension_numbers=(((1,), (1,)), ((), ())),
                            preferred_element_type=F32) * scale      # (S, S) f32
        s = jnp.where(allowed, s, -1e9)
        if zero_pad:
            # torch: first query row of the (pre-softmax) scores replaced by zeros
            s = jnp.where(first_row, 0.0, s)
        m = jnp.max(s, axis=-1, keepdims=True)
        p = jnp.exp(s - m)
        p = p / jnp.sum(p, axis=-1, keepdims=True)
        ctx_h = jnp.dot(p.astype(BF16), v[:, sl],
                        preferred_element_type=F32)                  # (S, dk) f32
        ctx_parts.append(ctx_h * r[:, hh:hh + 1])                    # routing gate

    o_ref[0] = jnp.concatenate(ctx_parts, axis=1).astype(o_ref.dtype)


def moh_attention(q3, k3, v3, r3, causal_offset, zero_pad, n_heads, d_k):
    bs, S, D = q3.shape
    spec_d = pl.BlockSpec((1, S, D), lambda b: (b, 0, 0))
    spec_h = pl.BlockSpec((1, S, n_heads), lambda b: (b, 0, 0))
    est = 2 * (4 * S * D * 2 + S * n_heads * 4) + 4 * S * S * 4 + S * D * 4 + (4 << 20)
    return pl.pallas_call(
        functools.partial(_moh_attn_kernel, n_heads=n_heads, d_k=d_k,
                          causal_offset=causal_offset, zero_pad=zero_pad,
                          scale=1.0 / (d_k ** 0.5)),
        grid=(bs,),
        in_specs=[spec_d, spec_d, spec_d, spec_h],
        out_specs=spec_d,
        out_shape=jax.ShapeDtypeStruct((bs, S, D), BF16),
        compiler_params=_cparams(est),
    )(q3, k3, v3, r3)


# ------------------------------------------------------------------
# Kernel 3: out-proj + residual + LN1 + FFN(ReLU) + residual + LN2 (fused)
# ------------------------------------------------------------------

def _out_ffn_ln_kernel(ctx_ref, res_ref, wo_ref, bo_ref, g1_ref, be1_ref,
                       w1_ref, b1_ref, w2_ref, b2_ref, g2_ref, be2_ref,
                       o_ref, *, eps):
    att = jnp.dot(ctx_ref[...], wo_ref[...], preferred_element_type=F32) + bo_ref[...]
    x = res_ref[...] + att
    mu = jnp.mean(x, axis=-1, keepdims=True)
    var = jnp.mean((x - mu) ** 2, axis=-1, keepdims=True)
    x = (x - mu) * lax.rsqrt(var + eps) * g1_ref[...] + be1_ref[...]

    hdn = jnp.dot(x.astype(BF16), w1_ref[...], preferred_element_type=F32) + b1_ref[...]
    hdn = jnp.maximum(hdn, 0.0)
    y = jnp.dot(hdn.astype(BF16), w2_ref[...], preferred_element_type=F32) + b2_ref[...]

    z = x + y
    mu = jnp.mean(z, axis=-1, keepdims=True)
    var = jnp.mean((z - mu) ** 2, axis=-1, keepdims=True)
    o_ref[...] = ((z - mu) * lax.rsqrt(var + eps) * g2_ref[...]
                  + be2_ref[...]).astype(o_ref.dtype)


def out_ffn_ln(ctx_bf, res_f32, params, eps=1e-5):
    N, D = ctx_bf.shape
    # TODO(synk): torch transformer_FFN uses square (d_model, d_model) weights;
    #             cfg["d_ff"] is unused by the reference module.
    wo = params["wo"].astype(BF16)
    bo = params["bo"].reshape(1, D).astype(F32)
    w1 = params["w1"].astype(BF16)
    b1 = params["b1"].reshape(1, D).astype(F32)
    w2 = params["w2"].astype(BF16)
    b2 = params["b2"].reshape(1, D).astype(F32)
    g1 = params["ln1_g"].reshape(1, D).astype(F32)
    be1 = params["ln1_b"].reshape(1, D).astype(F32)
    g2 = params["ln2_g"].reshape(1, D).astype(F32)
    be2 = params["ln2_b"].reshape(1, D).astype(F32)

    bpr = 2 * (D * 2 + D * 4 + D * 4)   # ctx(bf16) + res(f32) in, out(f32); x2 buffers
    R = _row_tile(N, bpr)
    T = pl.cdiv(N, R)

    row_bf = pl.BlockSpec((R, D), lambda i: (i, 0))
    row_f = pl.BlockSpec((R, D), lambda i: (i, 0))
    w_spec = _const_spec((D, D))
    v_spec = _const_spec((1, D))

    est = 3 * D * D * 2 + 8 * D * 4 + R * bpr + 3 * R * D * 4 + (4 << 20)

    return pl.pallas_call(
        functools.partial(_out_ffn_ln_kernel, eps=eps),
        grid=(T,),
        in_specs=[row_bf, row_f, w_spec, v_spec, v_spec, v_spec,
                  w_spec, v_spec, w_spec, v_spec, v_spec, v_spec],
        out_specs=row_f,
        out_shape=jax.ShapeDtypeStruct((N, D), F32),
        compiler_params=_cparams(est),
    )(ctx_bf, res_f32, wo, bo, g1, be1, w1, b1, w2, b2, g2, be2)


# ------------------------------------------------------------------
# Layer forward (glue) — only free reshapes between kernels
# ------------------------------------------------------------------

def router_transformer_layer(params, cfg, mask_flag, query, key_in, values, q4router):
    D = cfg["d_model"]
    h = cfg["n_heads"]
    d_k = cfg["d_feature"]

    bs, S, _ = query.shape
    N = bs * S

    qf32 = query.reshape(N, D).astype(F32)          # f32 residual path
    q_bf = qf32.astype(BF16)
    k_bf = key_in.reshape(N, D).astype(BF16)
    v_bf = values.reshape(N, D).astype(BF16)
    r_bf = q4router.reshape(N, D).astype(BF16)

    qp, kp, vp, routing, stats = qkv_router(q_bf, k_bf, v_bf, r_bf, params, cfg)

    # balance loss from tiny per-tile partial sums
    gsum = stats[:, 0, :].sum(axis=0)
    ssum = stats[:, 1, :].sum(axis=0)
    head_routing_probs = gsum / N
    f = ssum / (ssum.sum() + 1e-5)
    P = head_routing_probs / (head_routing_probs.sum() + 1e-5)
    balance_loss = jnp.sum(f * P)

    if mask_flag == 0:
        causal_offset, zero_pad = 1, True
    else:
        causal_offset, zero_pad = 0, False

    # free reshapes only
    q3 = qp.reshape(bs, S, D)
    k3 = kp.reshape(bs, S, D)
    v3 = vp.reshape(bs, S, D)
    r3 = routing.reshape(bs, S, h)

    ctx = moh_attention(q3, k3, v3, r3, causal_offset, zero_pad, h, d_k)
    ctx_flat = ctx.reshape(N, D)

    out = out_ffn_ln(ctx_flat, qf32, params)
    return out.reshape(bs, S, D), balance_loss


# ------------------------------------------------------------------
# Pure-JAX reference (mirrors the torch forward with the same bf16-operand /
# f32-accumulate matmul numerics) for a tight correctness check
# ------------------------------------------------------------------

def reference(params, cfg, mask_flag, query, key_in, values, q4router):
    D = cfg["d_model"]; h = cfg["n_heads"]; hs = cfg["n_shared_heads"]
    nd = h - hs; nsel = cfg["n_selected_heads"]; d_k = cfg["d_feature"]
    kq_same = cfg["kq_same"]
    bs, S, _ = query.shape
    N = bs * S
    scale = 1.0 / (d_k ** 0.5)

    def mm(x, w):
        return jnp.dot(x.astype(BF16), w.astype(BF16), preferred_element_type=F32)

    def ln(x, g, b, eps=1e-5):
        mu = x.mean(-1, keepdims=True)
        var = ((x - mu) ** 2).mean(-1, keepdims=True)
        return (x - mu) * lax.rsqrt(var + eps) * g + b

    qf = query.reshape(N, D).astype(F32)
    kf = key_in.reshape(N, D).astype(F32)
    vf = values.reshape(N, D).astype(F32)
    rf = q4router.reshape(N, D).astype(F32)

    qp = (mm(qf, params["wq"]) + params["bq"]).astype(BF16)
    kp = qp if kq_same else (mm(kf, params["wk"]) + params["bk"]).astype(BF16)
    vp = (mm(vf, params["wv"]) + params["bv"]).astype(BF16)

    logits = mm(rf, params["wg"])
    gates = jax.nn.softmax(logits, axis=1)
    colg = jnp.arange(nd)[None, :]
    work = gates
    sel = jnp.zeros_like(gates)
    for _ in range(nsel):
        mx = jnp.max(work, axis=-1, keepdims=True)
        cand = jnp.where(work == mx, colg, nd)
        idx = jnp.min(cand, axis=-1, keepdims=True)
        onehot = (colg == idx).astype(F32)
        sel = sel + onehot
        work = jnp.where(onehot > 0, -1e30, work)
    dyn = gates * sel
    hp = gates.mean(axis=0)
    hsel = sel.sum(axis=0)
    f = hsel / (hsel.sum() + 1e-5)
    P = hp / (hp.sum() + 1e-5)
    balance_loss = jnp.sum(f * P)

    qh = qp.reshape(bs, S, h, d_k)
    kh = kp.reshape(bs, S, h, d_k)
    vh = vp.reshape(bs, S, h, d_k)
    scores = jnp.einsum("bqhd,bkhd->bhqk", qh, kh,
                        preferred_element_type=F32) * scale
    row = jnp.arange(S)[:, None]
    col = jnp.arange(S)[None, :]
    if mask_flag == 0:
        allowed = col <= row - 1
        zero_pad = True
    else:
        allowed = col <= row
        zero_pad = False
    scores = jnp.where(allowed[None, None], scores, -1e9)
    if zero_pad:
        scores = jnp.where((row == 0)[None, None], 0.0, scores)

    attn = jax.nn.softmax(scores, axis=-1)
    ctx = jnp.einsum("bhqk,bkhd->bqhd", attn.astype(BF16), vh,
                     preferred_element_type=F32)
    routing = jnp.concatenate([jnp.ones((N, hs), F32), dyn], axis=-1).reshape(bs, S, h)
    ctx = (ctx * routing[..., None]).astype(BF16).reshape(N, D)

    att_out = mm(ctx, params["wo"]) + params["bo"]
    x = ln(qf + att_out, params["ln1_g"], params["ln1_b"])
    hdn = jnp.maximum(mm(x, params["w1"]) + params["b1"], 0.0)
    y = mm(hdn, params["w2"]) + params["b2"]
    x = ln(x + y, params["ln2_g"], params["ln2_b"])
    return x.reshape(bs, S, D), balance_loss


# ------------------------------------------------------------------
# Deterministic synthetic parameters (shapes follow the module __init__)
# ------------------------------------------------------------------

def init_params(key, d_model, n_heads, n_shared):
    nd = n_heads - n_shared
    keys = jax.random.split(key, 16)

    def w(k, shape, scale=0.05):
        return jax.random.normal(k, shape, F32) * scale

    return {
        "wq": w(keys[0], (d_model, d_model)), "bq": w(keys[1], (d_model,)),
        "wk": w(keys[2], (d_model, d_model)), "bk": w(keys[3], (d_model,)),
        "wv": w(keys[4], (d_model, d_model)), "bv": w(keys[5], (d_model,)),
        "wo": w(keys[6], (d_model, d_model)), "bo": w(keys[7], (d_model,)),
        "wg": w(keys[8], (d_model, nd)),
        "w1": w(keys[9], (d_model, d_model)), "b1": w(keys[10], (d_model,)),
        "w2": w(keys[11], (d_model, d_model)), "b2": w(keys[12], (d_model,)),
        "ln1_g": jnp.ones((d_model,), F32), "ln1_b": jnp.zeros((d_model,), F32),
        "ln2_g": jnp.ones((d_model,), F32), "ln2_b": jnp.zeros((d_model,), F32),
    }


if __name__ == "__main__":
    cfg = dict(d_model=32, d_feature=8, d_ff=64, n_heads=4, n_shared_heads=2,
               n_selected_heads=1, kq_same=False, dropout=0.0)
    bs, S = 2, 8

    key = jax.random.PRNGKey(0)
    k1, k2, k3, k4, k5 = jax.random.split(key, 5)
    params = init_params(k1, cfg["d_model"], cfg["n_heads"], cfg["n_shared_heads"])
    query = jax.random.normal(k2, (bs, S, cfg["d_model"]), F32)
    key_in = jax.random.normal(k3, (bs, S, cfg["d_model"]), F32)
    values = jax.random.normal(k4, (bs, S, cfg["d_model"]), F32)
    q4router = jax.random.normal(k5, (bs, S, cfg["d_model"]), F32)

    for kq_same in (False, True):
        cfg["kq_same"] = kq_same
        for mask_flag in (1, 0):   # causal-with-diagonal, strict-causal + zero_pad
            out, bl = router_transformer_layer(params, cfg, mask_flag,
                                               query, key_in, values, q4router)
            jax.block_until_ready((out, bl))
            ref_out, ref_bl = reference(params, cfg, mask_flag,
                                        query, key_in, values, q4router)
            assert np.allclose(np.asarray(out), np.asarray(ref_out),
                               atol=2e-3, rtol=2e-3), \
                f"output mismatch kq_same={kq_same} mask={mask_flag}"
            assert np.allclose(float(bl), float(ref_bl), atol=1e-4), \
                f"balance loss mismatch kq_same={kq_same} mask={mask_flag}"

    print("KERNEL_OK")
</pallas_src>

<mosaic_0001>
module attributes {stable_mosaic.version = 11 : i64} {
  func.func @_qkv_router_kernel(%arg0: i32, %arg1: memref<16x32xbf16, #tpu.memory_space<vmem>>, %arg2: memref<16x32xbf16, #tpu.memory_space<vmem>>, %arg3: memref<16x32xbf16, #tpu.memory_space<vmem>>, %arg4: memref<16x32xbf16, #tpu.memory_space<vmem>>, %arg5: memref<32x32xbf16, #tpu.memory_space<vmem>>, %arg6: memref<1x32xf32, #tpu.memory_space<vmem>>, %arg7: memref<32x32xbf16, #tpu.memory_space<vmem>>, %arg8: memref<1x32xf32, #tpu.memory_space<vmem>>, %arg9: memref<32x32xbf16, #tpu.memory_space<vmem>>, %arg10: memref<1x32xf32, #tpu.memory_space<vmem>>, %arg11: memref<32x2xbf16, #tpu.memory_space<vmem>>, %arg12: memref<16x32xbf16, #tpu.memory_space<vmem>>, %arg13: memref<16x32xbf16, #tpu.memory_space<vmem>>, %arg14: memref<16x32xbf16, #tpu.memory_space<vmem>>, %arg15: memref<16x4xf32, #tpu.memory_space<vmem>>, %arg16: memref<1x2x2xf32, #tpu.memory_space<vmem>>) attributes {dimension_semantics = [#tpu.dimension_semantics<parallel>], iteration_bounds = array<i64: 1>, scalar_prefetch = 0 : i64, scratch_operands = 0 : i64, tpu.core_type = #tpu.core_type<tc>, window_params = [{transform_indices = @transform_0, window_bounds = array<i64: 16, 32>}, {transform_indices = @transform_1, window_bounds = array<i64: 16, 32>}, {transform_indices = @transform_2, window_bounds = array<i64: 16, 32>}, {transform_indices = @transform_3, window_bounds = array<i64: 16, 32>}, {pipeline_mode = #tpu.pipeline_mode<synchronous>, transform_indices = @transform_4, window_bounds = array<i64: 32, 32>}, {pipeline_mode = #tpu.pipeline_mode<synchronous>, transform_indices = @transform_5, window_bounds = array<i64: 1, 32>}, {pipeline_mode = #tpu.pipeline_mode<synchronous>, transform_indices = @transform_6, window_bounds = array<i64: 32, 32>}, {pipeline_mode = #tpu.pipeline_mode<synchronous>, transform_indices = @transform_7, window_bounds = array<i64: 1, 32>}, {pipeline_mode = #tpu.pipeline_mode<synchronous>, transform_indices = @transform_8, window_bounds = array<i64: 32, 32>}, {pipeline_mode = #tpu.pipeline_mode<synchronous>, transform_indices = @transform_9, window_bounds = array<i64: 1, 32>}, {pipeline_mode = #tpu.pipeline_mode<synchronous>, transform_indices = @transform_10, window_bounds = array<i64: 32, 2>}, {transform_indices = @transform_11, window_bounds = array<i64: 16, 32>}, {transform_indices = @transform_12, window_bounds = array<i64: 16, 32>}, {transform_indices = @transform_13, window_bounds = array<i64: 16, 32>}, {transform_indices = @transform_14, window_bounds = array<i64: 16, 4>}, {transform_indices = @transform_15, window_bounds = array<i64: 1, 2, 2>}]} {
    %c0 = arith.constant 0 : index
    %c0_0 = arith.constant 0 : index
    %0 = vector.load %arg1[%c0, %c0_0] : memref<16x32xbf16, #tpu.memory_space<vmem>>, vector<16x32xbf16>
    %c0_1 = arith.constant 0 : index
    %c0_2 = arith.constant 0 : index
    %1 = vector.load %arg5[%c0_1, %c0_2] : memref<32x32xbf16, #tpu.memory_space<vmem>>, vector<32x32xbf16>
    %cst = arith.constant dense<0.000000e+00> : vector<16x32xf32>
    %2 = tpu.matmul %0, %1, %cst {dimension_numbers = #tpu.dot_dimension_numbers<[1], [0], [0], [1], [0, 0, 1, 1], [], []>} : vector<16x32xbf16>, vector<32x32xbf16>, vector<16x32xf32> -> vector<16x32xf32>
    %c0_3 = arith.constant 0 : index
    %c0_4 = arith.constant 0 : index
    %3 = vector.load %arg6[%c0_3, %c0_4] : memref<1x32xf32, #tpu.memory_space<vmem>>, vector<1x32xf32>
    %4 = vector.broadcast %3 : vector<1x32xf32> to vector<16x32xf32>
    %5 = arith.addf %2, %4 : vector<16x32xf32>
    %6 = arith.truncf %5 : vector<16x32xf32> to vector<16x32xbf16>
    %c0_5 = arith.constant 0 : index
    %c0_6 = arith.constant 0 : index
    %7 = vector.load %arg12[%c0_5, %c0_6] : memref<16x32xbf16, #tpu.memory_space<vmem>>, vector<16x32xbf16>
    tpu.vector_store %arg12[%c0_5, %c0_6], %6 {strides = array<i32>} : memref<16x32xbf16, #tpu.memory_space<vmem>>, vector<16x32xbf16>,
    %c0_7 = arith.constant 0 : index
    %c0_8 = arith.constant 0 : index
    %8 = vector.load %arg2[%c0_7, %c0_8] : memref<16x32xbf16, #tpu.memory_space<vmem>>, vector<16x32xbf16>
    %c0_9 = arith.constant 0 : index
    %c0_10 = arith.constant 0 : index
    %9 = vector.load %arg7[%c0_9, %c0_10] : memref<32x32xbf16, #tpu.memory_space<vmem>>, vector<32x32xbf16>
    %cst_11 = arith.constant dense<0.000000e+00> : vector<16x32xf32>
    %10 = tpu.matmul %8, %9, %cst_11 {dimension_numbers = #tpu.dot_dimension_numbers<[1], [0], [0], [1], [0, 0, 1, 1], [], []>} : vector<16x32xbf16>, vector<32x32xbf16>, vector<16x32xf32> -> vector<16x32xf32>
    %c0_12 = arith.constant 0 : index
    %c0_13 = arith.constant 0 : index
    %11 = vector.load %arg8[%c0_12, %c0_13] : memref<1x32xf32, #tpu.memory_space<vmem>>, vector<1x32xf32>
    %12 = vector.broadcast %11 : vector<1x32xf32> to vector<16x32xf32>
    %13 = arith.addf %10, %12 : vector<16x32xf32>
    %14 = arith.truncf %13 : vector<16x32xf32> to vector<16x32xbf16>
    %c0_14 = arith.constant 0 : index
    %c0_15 = arith.constant 0 : index
    %15 = vector.load %arg13[%c0_14, %c0_15] : memref<16x32xbf16, #tpu.memory_space<vmem>>, vector<16x32xbf16>
    tpu.vector_store %arg13[%c0_14, %c0_15], %14 {strides = array<i32>} : memref<16x32xbf16, #tpu.memory_space<vmem>>, vector<16x32xbf16>,
    %c0_16 = arith.constant 0 : index
    %c0_17 = arith.constant 0 : index
    %16 = vector.load %arg3[%c0_16, %c0_17] : memref<16x32xbf16, #tpu.memory_space<vmem>>, vector<16x32xbf16>
    %c0_18 = arith.constant 0 : index
    %c0_19 = arith.constant 0 : index
    %17 = vector.load %arg9[%c0_18, %c0_19] : memref<32x32xbf16, #tpu.memory_space<vmem>>, vector<32x32xbf16>
    %cst_20 = arith.constant dense<0.000000e+00> : vector<16x32xf32>
    %18 = tpu.matmul %16, %17, %cst_20 {dimension_numbers = #tpu.dot_dimension_numbers<[1], [0], [0], [1], [0, 0, 1, 1], [], []>} : vector<16x32xbf16>, vector<32x32xbf16>, vector<16x32xf32> -> vector<16x32xf32>
    %c0_21 = arith.constant 0 : index
    %c0_22 = arith.constant 0 : index
    %19 = vector.load %arg10[%c0_21, %c0_22] : memref<1x32xf32, #tpu.memory_space<vmem>>, vector<1x32xf32>
    %20 = vector.broadcast %19 : vector<1x32xf32> to vector<16x32xf32>
    %21 = arith.addf %18, %20 : vector<16x32xf32>
    %22 = arith.truncf %21 : vector<16x32xf32> to vector<16x32xbf16>
    %c0_23 = arith.constant 0 : index
    %c0_24 = arith.constant 0 : index
    %23 = vector.load %arg14[%c0_23, %c0_24] : memref<16x32xbf16, #tpu.memory_space<vmem>>, vector<16x32xbf16>
    tpu.vector_store %arg14[%c0_23, %c0_24], %22 {strides = array<i32>} : memref<16x32xbf16, #tpu.memory_space<vmem>>, vector<16x32xbf16>,
    %c0_25 = arith.constant 0 : index
    %c0_26 = arith.constant 0 : index
    %24 = vector.load %arg4[%c0_25, %c0_26] : memref<16x32xbf16, #tpu.memory_space<vmem>>, vector<16x32xbf16>
    %c0_27 = arith.constant 0 : index
    %c0_28 = arith.constant 0 : index
    %25 = vector.load %arg11[%c0_27, %c0_28] : memref<32x2xbf16, #tpu.memory_space<vmem>>, vector<32x2xbf16>
    %cst_29 = arith.constant dense<0.000000e+00> : vector<16x2xf32>
    %26 = tpu.matmul %24, %25, %cst_29 {dimension_numbers = #tpu.dot_dimension_numbers<[1], [0], [0], [1], [0, 0, 1, 1], [], []>} : vector<16x32xbf16>, vector<32x2xbf16>, vector<16x2xf32> -> vector<16x2xf32>
    %c16_i32 = arith.constant 16 : i32
    %27 = arith.muli %arg0, %c16_i32 : i32
    %28 = tpu.iota {dimensions = array<i32: 0>} : vector<16x1xi32>
    %29 = vector.broadcast %27 : i32 to vector<16x1xi32>
    %30 = arith.addi %29, %28 : vector<16x1xi32>
    %c16_i32_30 = arith.constant 16 : i32
    %31 = vector.broadcast %c16_i32_30 : i32 to vector<16x1xi32>
    %32 = arith.cmpi slt, %30, %31 : vector<16x1xi32>
    %cst_31 = arith.constant 0.000000e+00 : f32
    %33 = vector.shape_cast %32 : vector<16x1xi1> to vector<16x1xi1>
    %34 = vector.broadcast %33 : vector<16x1xi1> to vector<16x2xi1>
    %35 = vector.broadcast %cst_31 : f32 to vector<16x2xf32>
    %36 = arith.select %34, %26, %35 : vector<16x2xi1>, vector<16x2xf32>
    %cst_32 = arith.constant dense<0xFF800000> : vector<16xf32>
    %37 = vector.multi_reduction <maximumf>, %36, %cst_32 [1] : vector<16x2xf32> to vector<16xf32>
    %38 = vector.shape_cast %37 : vector<16xf32> to vector<16x1xf32>
    %39 = vector.broadcast %38 : vector<16x1xf32> to vector<16x2xf32>
    %40 = arith.subf %36, %39 : vector<16x2xf32>
    %41 = math.exp %40 : vector<16x2xf32>
    %cst_33 = arith.constant dense<0.000000e+00> : vector<16xf32>
    %42 = vector.multi_reduction <add>, %41, %cst_33 [1] : vector<16x2xf32> to vector<16xf32>
    %43 = vector.shape_cast %42 : vector<16xf32> to vector<16x1xf32>
    %44 = vector.broadcast %43 : vector<16x1xf32> to vector<16x2xf32>
    %45 = arith.divf %41, %44 : vector<16x2xf32>
    %46 = tpu.iota {dimensions = array<i32: 1>} : vector<16x2xi32>
    %cst_34 = arith.constant 0.000000e+00 : f32
    %47 = vector.broadcast %cst_34 : f32 to vector<16x2xf32>
    %cst_35 = arith.constant dense<0xFF800000> : vector<16xf32>
    %48 = vector.multi_reduction <maximumf>, %45, %cst_35 [1] : vector<16x2xf32> to vector<16xf32>
    %49 = vector.shape_cast %48 : vector<16xf32> to vector<16x1xf32>
    %50 = vector.broadcast %49 : vector<16x1xf32> to vector<16x2xf32>
    %51 = arith.cmpf oeq, %45, %50 : vector<16x2xf32>
    %c2_i32 = arith.constant 2 : i32
    %52 = vector.broadcast %c2_i32 : i32 to vector<16x2xi32>
    %53 = arith.select %51, %46, %52 : vector<16x2xi1>, vector<16x2xi32>
    %cst_36 = arith.constant dense<2147483647> : vector<16xi32>
    %54 = vector.multi_reduction <minsi>, %53, %cst_36 [1] : vector<16x2xi32> to vector<16xi32>
    %55 = vector.shape_cast %54 : vector<16xi32> to vector<16x1xi32>
    %56 = vector.broadcast %55 : vector<16x1xi32> to vector<16x2xi32>
    %57 = arith.cmpi eq, %46, %56 : vector<16x2xi32>
    %58 = arith.extui %57 : vector<16x2xi1> to vector<16x2xi32>
    %59 = arith.sitofp %58 : vector<16x2xi32> to vector<16x2xf32>
    %60 = arith.addf %47, %59 : vector<16x2xf32>
    %61 = arith.extui %32 : vector<16x1xi1> to vector<16x1xi32>
    %62 = arith.sitofp %61 : vector<16x1xi32> to vector<16x1xf32>
    %63 = vector.broadcast %62 : vector<16x1xf32> to vector<16x2xf32>
    %64 = arith.mulf %45, %63 : vector<16x2xf32>
    %cst_37 = arith.constant dense<0.000000e+00> : vector<2xf32>
    %65 = vector.multi_reduction <add>, %64, %cst_37 [0] : vector<16x2xf32> to vector<2xf32>
    %66 = vector.shape_cast %65 : vector<2xf32> to vector<1x2xf32>
    %67 = vector.broadcast %62 : vector<16x1xf32> to vector<16x2xf32>
    %68 = arith.mulf %60, %67 : vector<16x2xf32>
    %cst_38 = arith.constant dense<0.000000e+00> : vector<2xf32>
    %69 = vector.multi_reduction <add>, %68, %cst_38 [0] : vector<16x2xf32> to vector<2xf32>
    %70 = vector.shape_cast %69 : vector<2xf32> to vector<1x2xf32>
    %71 = tpu.concatenate %66, %70 in 0 : vector<1x2xf32>, vector<1x2xf32> -> vector<2x2xf32>
    %c0_39 = arith.constant 0 : index
    %c0_40 = arith.constant 0 : index
    %c0_41 = arith.constant 0 : index
    %72 = vector.load %arg16[%c0_39, %c0_40, %c0_41] : memref<1x2x2xf32, #tpu.memory_space<vmem>>, vector<1x2x2xf32>
    %73 = vector.shape_cast %72 : vector<1x2x2xf32> to vector<2x2xf32>
    %74 = vector.shape_cast %71 : vector<2x2xf32> to vector<1x2x2xf32>
    tpu.vector_store %arg16[%c0_39, %c0_40, %c0_41], %74 {strides = array<i32>} : memref<1x2x2xf32, #tpu.memory_space<vmem>>, vector<1x2x2xf32>,
    %75 = arith.mulf %45, %60 : vector<16x2xf32>
    %cst_42 = arith.constant 1.000000e+00 : f32
    %76 = vector.broadcast %cst_42 : f32 to vector<16x2xf32>
    %77 = tpu.concatenate %76, %75 in 1 : vector<16x2xf32>, vector<16x2xf32> -> vector<16x4xf32>
    %c0_43 = arith.constant 0 : index
    %c0_44 = arith.constant 0 : index
    %78 = vector.load %arg15[%c0_43, %c0_44] : memref<16x4xf32, #tpu.memory_space<vmem>>, vector<16x4xf32>
    tpu.vector_store %arg15[%c0_43, %c0_44], %77 {strides = array<i32>} : memref<16x4xf32, #tpu.memory_space<vmem>>, vector<16x4xf32>,
    return
  }
  func.func @transform_0(%arg0: i32) -> (i32, i32) {
    %c0_i32 = arith.constant 0 : i32
    %c0_i32_0 = arith.constant 0 : i32
    return %arg0, %c0_i32 : i32, i32
  }
  func.func @transform_1(%arg0: i32) -> (i32, i32) {
    %c0_i32 = arith.constant 0 : i32
    %c0_i32_0 = arith.constant 0 : i32
    return %arg0, %c0_i32 : i32, i32
  }
  func.func @transform_2(%arg0: i32) -> (i32, i32) {
    %c0_i32 = arith.constant 0 : i32
    %c0_i32_0 = arith.constant 0 : i32
    return %arg0, %c0_i32 : i32, i32
  }
  func.func @transform_3(%arg0: i32) -> (i32, i32) {
    %c0_i32 = arith.constant 0 : i32
    %c0_i32_0 = arith.constant 0 : i32
    return %arg0, %c0_i32 : i32, i32
  }
  func.func @transform_4(%arg0: i32) -> (i32, i32) {
    %c0_i32 = arith.constant 0 : i32
    %c0_i32_0 = arith.constant 0 : i32
    %c0_i32_1 = arith.constant 0 : i32
    return %c0_i32, %c0_i32_0 : i32, i32
  }
  func.func @transform_5(%arg0: i32) -> (i32, i32) {
    %c0_i32 = arith.constant 0 : i32
    %c0_i32_0 = arith.constant 0 : i32
    %c0_i32_1 = arith.constant 0 : i32
    return %c0_i32, %c0_i32_0 : i32, i32
  }
  func.func @transform_6(%arg0: i32) -> (i32, i32) {
    %c0_i32 = arith.constant 0 : i32
    %c0_i32_0 = arith.constant 0 : i32
    %c0_i32_1 = arith.constant 0 : i32
    return %c0_i32, %c0_i32_0 : i32, i32
  }
  func.func @transform_7(%arg0: i32) -> (i32, i32) {
    %c0_i32 = arith.constant 0 : i32
    %c0_i32_0 = arith.constant 0 : i32
    %c0_i32_1 = arith.constant 0 : i32
    return %c0_i32, %c0_i32_0 : i32, i32
  }
  func.func @transform_8(%arg0: i32) -> (i32, i32) {
    %c0_i32 = arith.constant 0 : i32
    %c0_i32_0 = arith.constant 0 : i32
    %c0_i32_1 = arith.constant 0 : i32
    return %c0_i32, %c0_i32_0 : i32, i32
  }
  func.func @transform_9(%arg0: i32) -> (i32, i32) {
    %c0_i32 = arith.constant 0 : i32
    %c0_i32_0 = arith.constant 0 : i32
    %c0_i32_1 = arith.constant 0 : i32
    return %c0_i32, %c0_i32_0 : i32, i32
  }
  func.func @transform_10(%arg0: i32) -> (i32, i32) {
    %c0_i32 = arith.constant 0 : i32
    %c0_i32_0 = arith.constant 0 : i32
    %c0_i32_1 = arith.constant 0 : i32
    return %c0_i32, %c0_i32_0 : i32, i32
  }
  func.func @transform_11(%arg0: i32) -> (i32, i32) {
    %c0_i32 = arith.constant 0 : i32
    %c0_i32_0 = arith.constant 0 : i32
    return %arg0, %c0_i32 : i32, i32
  }
  func.func @transform_12(%arg0: i32) -> (i32, i32) {
    %c0_i32 = arith.constant 0 : i32
    %c0_i32_0 = arith.constant 0 : i32
    return %arg0, %c0_i32 : i32, i32
  }
  func.func @transform_13(%arg0: i32) -> (i32, i32) {
    %c0_i32 = arith.constant 0 : i32
    %c0_i32_0 = arith.constant 0 : i32
    return %arg0, %c0_i32 : i32, i32
  }
  func.func @transform_14(%arg0: i32) -> (i32, i32) {
    %c0_i32 = arith.constant 0 : i32
    %c0_i32_0 = arith.constant 0 : i32
    return %arg0, %c0_i32 : i32, i32
  }
  func.func @transform_15(%arg0: i32) -> (i32, i32, i32) {
    %c0_i32 = arith.constant 0 : i32
    %c0_i32_0 = arith.constant 0 : i32
    %c0_i32_1 = arith.constant 0 : i32
    return %arg0, %c0_i32, %c0_i32_0 : i32, i32, i32
  }
}

</mosaic_0001>

<bundles_post_ra>
// kernel: tpu_custom_call.1
= control target key start
LH: loop header
LB: loop body
LE: loop exit
PB: predicated region body
PF: predicated region fallthrough
CT: control target
= control target key end

     0   :  { %21 = vsyncpa [#allocation3], 0  ;;  %s1177_s0 = inlined_call_operand.vmem [shape: bf16[16,32], index: 0, kind: input, shape index: {}]   ;;  %s1178_s1 = inlined_call_operand.hbm [shape: bf16[16,32], index: 1, kind: input, shape index: {}]   ;;  %s1179_s2 = inlined_call_operand.hbm [shape: bf16[16,32], index: 2, kind: input, shape index: {}]   ;;  %s1180_s3 = inlined_call_operand.hbm [shape: bf16[16,32], index: 3, kind: input, shape index: {}]   ;;  %s1181_s4 = inlined_call_operand.vmem [shape: bf16[32,32], index: 4, kind: input, shape index: {}]   ;;  %s1182_s5 = inlined_call_operand.vmem [shape: f32[1,32], index: 5, kind: input, shape index: {}]   ;;  %s1183_s6 = inlined_call_operand.hbm [shape: bf16[32,32], index: 6, kind: input, shape index: {}]   ;;  %s1184_s7 = inlined_call_operand.vmem [shape: f32[1,32], index: 7, kind: input, shape index: {}]   ;;  %s1185_s8 = inlined_call_operand.hbm [shape: bf16[32,32], index: 8, kind: input, shape index: {}]   ;;  %s1186_s9 = inlined_call_operand.vmem [shape: f32[1,32], index: 9, kind: input, shape index: {}]   ;;  %s1187_s10 = inlined_call_operand.vmem [shape: bf16[32,2], index: 10, kind: input, shape index: {}]   ;;  %s1188_s11 = inlined_call_operand.hbm [shape: bf16[16,32], index: 11, kind: output, shape index: {0}]   ;;  %s1189_s12 = inlined_call_operand.hbm [shape: bf16[16,32], index: 12, kind: output, shape index: {1}]   ;;  %s1190_s13 = inlined_call_operand.hbm [shape: bf16[16,32], index: 13, kind: output, shape index: {2}]   ;;  %s1191_s14 = inlined_call_operand.vmem [shape: f32[16,4], index: 14, kind: output, shape index: {3}]   ;;  %s1192_s15 = inlined_call_operand.hbm [shape: f32[1,2,2], index: 15, kind: output, shape index: {4}]  }
   0x1   :  { %22 = vsyncpa [#allocation6], 0 }
   0x2   :  { %23 = vsyncpa [#allocation9], 0 }
   0x3   :  { %24 = vsyncpa [#allocation4], 0 }
   0x4   :  { %25 = vsyncpa [#allocation13], 0 }
   0x5   :  { %26 = vsyncpa [#allocation16], 0  ;;  %s938_s18 = smov [#allocation5]   ;;  %s939_s20 = smov [#allocation8]  }
   0x6   :  { %s46_s19 = sshll.u32 %s938_s18, 4  ;;  %s74_s21 = sshll.u32 %s939_s20, 4  ;;  %s47_s19 = int_to_ptr.vmem [resolvable:$true] %s46_s19  ;;  %s75_s21 = int_to_ptr.vmem [resolvable:$true] %s74_s21 }
   0x7   :  { %s754_s22 = scalar_lea.vmem %s47_s19, 128  ;;  %p759_p1 = scmp.lt.s32.totalorder %s47_s19, %s47_s19 }
   0x8   :  { %p755_p0 = scmp.ne.s32.totalorder %s47_s19, %s754_s22  ;;  %p760_p2 = scmp.lt.s32.totalorder %s754_s22, %s754_s22 }
   0xa   :  { %p761_p3 = por %p760_p2, %p759_p1 }
   0xc   :  { %p762_p4 = pnand %p761_p3, %p755_p0 }
   0xe   :  { %765 = shalt.err (!%p762_p4)
}
   0xf   :  { %s940_s23 = smov 64   ;;  %s941_s24 = smov 4  }
  0x10   :  { %52 = dma.hbm_to_vmem [thread:$0]  %s1179_s2, 128, %s47_s19, [#allocation6], %s940_s23, %s940_s23, %s941_s24  }
  0x11   :  { %s774_s27 = scalar_lea.vmem %s75_s21, 256  ;;  %p779_p6 = scmp.lt.s32.totalorder %s75_s21, %s75_s21 }
  0x12   :  { %p775_p5 = scmp.ne.s32.totalorder %s75_s21, %s774_s27  ;;  %p780_p7 = scmp.lt.s32.totalorder %s774_s27, %s774_s27 }
  0x14   :  { %p781_p8 = por %p780_p7, %p779_p6 }
  0x16   :  { %p782_p9 = pnand %p781_p8, %p775_p5 }
  0x18   :  { %785 = shalt.err (!%p782_p9)
}
  0x19   :  { %80 = dma.hbm_to_vmem [thread:$0]  %s1183_s6, 256, %s75_s21, [#allocation9], %s940_s23, %s940_s23, %s941_s24  }
  0x1a   :  { %s942_s30 = smov [#allocation2]   ;;  %s943_s17 = smov [#allocation7]  }
  0x1b   :  { %s34_s16 = sshll.u32 %s942_s30, 4  ;;  %s58_s18 = sshll.u32 %s943_s17, 4  ;;  %s35_s16 = int_to_ptr.vmem [resolvable:$true] %s34_s16  ;;  %s59_s18 = int_to_ptr.vmem [resolvable:$true] %s58_s18 }
  0x1c   :  { %s794_s2 = scalar_lea.vmem %s35_s16, 128  ;;  %p799_p11 = scmp.lt.s32.totalorder %s35_s16, %s35_s16 }
  0x1d   :  { %p795_p10 = scmp.ne.s32.totalorder %s35_s16, %s794_s2  ;;  %p800_p12 = scmp.lt.s32.totalorder %s794_s2, %s794_s2 }
  0x1f   :  { %p801_p13 = por %p800_p12, %p799_p11 }
  0x21   :  { %p802_p0 = pnand %p801_p13, %p795_p10 }
  0x23   :  { %805 = shalt.err (!%p802_p0)
}
  0x24   :  { %40 = dma.hbm_to_vmem [thread:$0]  %s1178_s1, 128, %s35_s16, [#allocation3], %s940_s23, %s940_s23, %s941_s24  }
  0x25   :  { %s814_s6 = scalar_lea.vmem %s59_s18, 128  ;;  %p819_p2 = scmp.lt.s32.totalorder %s59_s18, %s59_s18 }
  0x26   :  { %p815_p1 = scmp.ne.s32.totalorder %s59_s18, %s814_s6  ;;  %p820_p3 = scmp.lt.s32.totalorder %s814_s6, %s814_s6 }
  0x28   :  { %p821_p4 = por %p820_p3, %p819_p2 }
  0x2a   :  { %p822_p5 = pnand %p821_p4, %p815_p1 }
  0x2c   :  { %825 = shalt.err (!%p822_p5)
}
  0x2d   :  { %64 = dma.hbm_to_vmem [thread:$0]  %s1180_s3, 128, %s59_s18, [#allocation6], %s940_s23, %s940_s23, %s941_s24  }
  0x2e   :  { %s944_s25 = smov [#allocation10]  }
  0x2f   :  { %s88_s26 = sshll.u32 %s944_s25, 4  ;;  %s89_s26 = int_to_ptr.vmem [resolvable:$true] %s88_s26 }
  0x30   :  { %s834_s27 = scalar_lea.vmem %s89_s26, 256  ;;  %p839_p7 = scmp.lt.s32.totalorder %s89_s26, %s89_s26 }
  0x31   :  { %p835_p6 = scmp.ne.s32.totalorder %s89_s26, %s834_s27  ;;  %p840_p8 = scmp.lt.s32.totalorder %s834_s27, %s834_s27 }
  0x33   :  { %p841_p9 = por %p840_p8, %p839_p7 }
  0x35   :  { %p842_p10 = pnand %p841_p9, %p835_p6 }
  0x37   :  { %845 = shalt.err (!%p842_p10)
}
  0x38   :  { %94 = dma.hbm_to_vmem [thread:$0]  %s1185_s8, 256, %s89_s26, [#allocation9], %s940_s23, %s940_s23, %s941_s24  }
  0x39   :  { %926 = dma.done.wait [#allocation3], 128  }
  0x3a   :  { %927 = vsyncadd [#allocation3], 4294967168 }
  0x3b   :  { %928 = dma.done.wait [#allocation6], 256  }
  0x3c   :  { %929 = vsyncadd [#allocation6], 4294967040 }
  0x3d   :  { %930 = dma.done.wait [#allocation9], 512  }
  0x3e   :  { %931 = vsyncadd [#allocation9], 4294966784  ;;  %v945_v0 = vmov 0.0   ;;  %vm946_vm0 = vmmov 0   ;;  %v726_v1 = vld [vmem:[#allocation8 + $0x8] sm:$0xff]   ;;  %v727_v2 = vld [vmem:[#allocation8] sm:$0xff]   ;;  %v474_v40 = vlaneseq }
  0x3f   :  { %688 = vmatprep.subr.bf16.mxu1 %v945_v0  ;;  %692 = vmatprep.mubr.msk.bf16.mxu1 %vm946_vm0, %v945_v0  ;;  %v728_v3 = vld [vmem:[#allocation2] sm:$0xff]   ;;  %vm145_vm1 = vcmask 261120   ;;  %v729_v4 = vld [vmem:[%s1187_s10 + $0x8] sm:$0xff]   ;;  %v731_v6 = vld [vmem:[#allocation7] sm:$0xff]   ;;  %vm198_vm2 = vcmask 257024   ;;  %vm451_vm3 = vcmask 15360  }
  0x40   :  { %680 = vmatprep.subr.bf16.mxu0 %v945_v0  ;;  %684 = vmatprep.mubr.msk.bf16.mxu0 %vm946_vm0, %v945_v0  ;;  %v730_v5 = vld [vmem:[%s1187_s10] sm:$0xff]   ;;  %v1098_v41 = vand.u32 127, %v474_v40  ;;  %v732_v52 = vld [vmem:[%s1181_s4 + $0x8] sm:$0xff]   ;;  %v735_v55 = vld [vmem:[#allocation10 + $0x8] sm:$0xff]   ;;  %s948_s22 = smov [#allocation11]  }
  0x41   :  { %689 = vmatpush3.bf16.msra.mxu1 %v726_v1  ;;  %v642_v7 = vld [vmem:[%s1184_s7] ss:$0 sm:$0xff]  ;;  %681 = vmatpush3.bf16.msra.mxu0 %v732_v52  ;;  %v736_v56 = vld [vmem:[#allocation10] sm:$0xff]   ;;  %s572_s25 = sshll.u32 %s948_s22, 4  ;;  %s573_s25 = int_to_ptr.vmem [resolvable:$true] %s572_s25 }
  0x42   :  { %690 = vmatprep.subr.bf16.mxu1 %v945_v0  ;;  %v733_v53 = vld [vmem:[%s1181_s4] sm:$0xff]   ;;  %682 = vmatprep.subr.bf16.mxu0 %v945_v0  ;;  %v737_v57 = vld [vmem:[#allocation5] sm:$0xff]  }
  0x43   :  { %v734_v54 = vld [vmem:[%s1177_s0] sm:$0xff]  }
  0x45   :  { %691 = vmatpush3.bf16.msra.mxu1 %v727_v2  ;;  %683 = vmatpush3.bf16.msra.mxu0 %v733_v53 }
  0x46   :  { %704 = vmatprep.subr.bf16.mxu1 %v945_v0  ;;  %696 = vmatprep.subr.bf16.mxu0 %v945_v0 }
  0x48   :  { %693 = vmatmul.mubr.msk.bf16.vlgmr.msra.gmra.mxu1 %vm145_vm1, %v728_v3  ;;  %685 = vmatmul.mubr.msk.bf16.vlgmr.msra.gmra.mxu0 %vm145_vm1, %v734_v54  ;;  %v635_v3 = vld [vmem:[%s1182_s5] ss:$0 sm:$0xff]  ;;  %s947_s5 = smov [#allocation12]  }
  0x49   :  { %705 = vmatpush3.bf16.msra.mxu1 %v729_v4  ;;  %708 = vmatprep.mubr.msk.bf16.mxu1 %vm946_vm0, %v945_v0 }
  0x4a   :  { %706 = vmatprep.subr.bf16.mxu1 %v945_v0  ;;  %697 = vmatpush3.bf16.msra.mxu0 %v735_v55 }
  0x4b   :  { %700 = vmatprep.mubr.msk.bf16.mxu0 %vm946_vm0, %v945_v0  ;;  %698 = vmatprep.subr.bf16.mxu0 %v945_v0 }
  0x4d   :  { %707 = vmatpush3.bf16.msra.mxu1 %v730_v5 }
  0x4e   :  { %699 = vmatpush3.bf16.msra.mxu0 %v736_v56 }
  0x50   :  { %709 = vmatmul.mubr.msk.bf16.vlgmr.msra.gmra.mxu1 %vm145_vm1, %v731_v6 }
  0x51   :  { %701 = vmatmul.mubr.msk.bf16.vlgmr.msra.gmra.mxu0 %vm145_vm1, %v737_v57 }
 0x108   :  { %v268_v8 = vpop.f32.mrf.mxu1  ;;  %v183_v4 = vpop.f32.mrf.mxu0 }
 0x109   :  { %v269_v9 = vadd.f32 %v642_v7, %v268_v8  ;;  %v184_v5 = vadd.f32 %v635_v3, %v183_v4 }
 0x10a   :  { %v694_v10 = vpop.f32.mrf.mxu1  ;;  %v686_v6 = vpop.f32.mrf.mxu0 }
 0x10b   :  { %v664_v11 = vpack.c.bf16 %v269_v9, %v269_v9 }
 0x10c   :  { %v271_v12 = vpop.f32.mrf.mxu1  ;;  %v186_v8 = vpop.f32.mrf.mxu0 }
 0x10d   :  { %v272_v13 = vadd.f32 %v642_v7, %v271_v12  ;;  %283 = vst.msk [vmem:[#allocation12] sm:$0xf] %vm198_vm2, %v664_v11  ;;  %v662_v7 = vpack.c.bf16 %v184_v5, %v184_v5  ;;  %v187_v9 = vadd.f32 %v635_v3, %v186_v8  ;;  %v649_v11 = vld [vmem:[%s1186_s9] ss:$0 sm:$0xff]  ;;  %s584_s9 = sshll.u32 %s947_s5, 4  ;;  %s585_s9 = int_to_ptr.vmem [resolvable:$true] %s584_s9 }
 0x10e   :  { %v695_v14 = vpop.f32.mrf.mxu1  ;;  %v687_v10 = vpop.f32.mrf.mxu0  ;;  %s846_s26 = scalar_lea.vmem %s585_s9, 128  ;;  %p851_p12 = scmp.lt.s32.totalorder %s585_s9, %s585_s9 }
 0x10f   :  { %v665_v15 = vpack.c.bf16 %v272_v13, %v272_v13  ;;  %199 = vst.msk [vmem:[#allocation11] sm:$0xf] %vm198_vm2, %v662_v7  ;;  %v663_v12 = vpack.c.bf16 %v187_v9, %v187_v9  ;;  %p847_p11 = scmp.ne.s32.totalorder %s585_s9, %s846_s26  ;;  %p852_p13 = scmp.lt.s32.totalorder %s846_s26, %s846_s26 }
 0x110   :  { %v429_v16 = vpop.f32.mrf.mxu1 }
 0x111   :  { %v452_v17 = vsel %vm451_vm3, %v429_v16, -inf  ;;  %284 = vst.msk [vmem:[#allocation12 + $0x4] sm:$0xf] %vm198_vm2, %v665_v15  ;;  %v352_v13 = vpop.f32.mrf.mxu0  ;;  %200 = vst.msk [vmem:[#allocation11 + $0x4] sm:$0xf] %vm198_vm2, %v663_v12  ;;  %p853_p0 = por %p852_p13, %p851_p12 }
 0x112   :  { %453 = vmax.xlane.f32.xlu0 %v452_v17  ;;  %v710_v18 = vpop.f32.mrf.mxu1  ;;  %v353_v14 = vadd.f32 %v649_v11, %v352_v13 }
 0x113   :  { %v702_v15 = vpop.f32.mrf.mxu0  ;;  %p854_p1 = pnand %p853_p0, %p847_p11 }
 0x114   :  { %v432_v19 = vpop.f32.mrf.mxu1 }
 0x115   :  { %v455_v20 = vsel %vm451_vm3, %v432_v19, -inf  ;;  %v355_v17 = vpop.f32.mrf.mxu0 }
 0x116   :  { %456 = vmax.xlane.f32.xlu0 %v455_v20  ;;  %v711_v21 = vpop.f32.mrf.mxu1  ;;  %v356_v18 = vadd.f32 %v649_v11, %v355_v17 }
 0x118   :  { %v667_v20 = vpack.c.bf16 %v356_v18, %v356_v18 }
 0x11a   :  { %368 = vst.msk [vmem:[#allocation14 + $0x4] sm:$0xf] %vm198_vm2, %v667_v20 }
 0x19b   :  { %v454_v22 = vpop.xlane.xlu0 %453 }
 0x19c   :  { %v458_v23 = vsub.f32 %v429_v16, %v454_v22  ;;  %v666_v16 = vpack.c.bf16 %v353_v14, %v353_v14 }
 0x19e   :  { %v460_v24 = vmul.f32 1.442695, %v458_v23  ;;  %367 = vst.msk [vmem:[#allocation14] sm:$0xf] %vm198_vm2, %v666_v16 }
 0x19f   :  { %v457_v25 = vpop.xlane.xlu0 %456 }
 0x1a0   :  { %738 = vpow2.f32 %v460_v24  ;;  %v459_v26 = vsub.f32 %v432_v19, %v457_v25  ;;  %v703_v19 = vpop.f32.mrf.mxu0 }
 0x1a2   :  { %v462_v27 = vmul.f32 1.442695, %v459_v26 }
 0x1a4   :  { %740 = vpow2.f32 %v462_v27 }
 0x1ad   :  { %v739_v28 = vpop.eup %738 }
 0x1ae   :  { %v464_v29 = vsel %vm451_vm3, %v739_v28, 0.0 }
 0x1af   :  { %465 = vadd.xlane.f32.xlu1 %v464_v29 }
 0x1b1   :  { %v741_v30 = vpop.eup %740 }
 0x1b2   :  { %v467_v31 = vsel %vm451_vm3, %v741_v30, 0.0 }
 0x1b3   :  { %468 = vadd.xlane.f32.xlu1 %v467_v31 }
 0x238   :  { %v466_v32 = vpop.xlane.xlu1 %465 }
 0x239   :  { %742 = vrcp.f32 %v466_v32 }
 0x23c   :  { %v469_v33 = vpop.xlane.xlu1 %468 }
 0x23d   :  { %744 = vrcp.f32 %v469_v33 }
 0x246   :  { %v743_v34 = vpop.eup %742 }
 0x247   :  { %v1090_v35 = vmul.f32 %v743_v34, %v739_v28 }
 0x249   :  { %v476_v36 = vsel %vm451_vm3, %v1090_v35, -inf  ;;  %v528_v23 = vsel %vm451_vm3, %v1090_v35, 0.0 }
 0x24a   :  { %v745_v37 = vpop.eup %744  ;;  %477 = vmax.xlane.f32.xlu0 %v476_v36 }
 0x24b   :  { %v1094_v38 = vmul.f32 %v745_v37, %v741_v30 }
 0x24d   :  { %v479_v39 = vsel %vm451_vm3, %v1094_v38, -inf  ;;  %v529_v22 = vsel %vm451_vm3, %v1094_v38, 0.0 }
 0x24e   :  { %480 = vmax.xlane.f32.xlu1 %v479_v39 }
 0x2d3   :  { %v478_v42 = vpop.xlane.xlu0 %477 }
 0x2d4   :  { %vm482_vm4 = vcmp.eq.f32.partialorder %v1090_v35, %v478_v42 }
 0x2d5   :  { %v484_v43 = vsel %vm482_vm4, %v1098_v41, 2 }
 0x2d6   :  { %v486_v44 = vsel %vm451_vm3, %v484_v43, 2147483647 }
 0x2d7   :  { %v481_v45 = vpop.xlane.xlu1 %480  ;;  %v488_v46 = vshra.s32 %v486_v44, 16  ;;  %v487_v58 = vand.u32 65535, %v486_v44 }
 0x2d8   :  { %vm483_vm5 = vcmp.eq.f32.partialorder %v1094_v38, %v481_v45 }
 0x2d9   :  { %v485_v47 = vsel %vm483_vm5, %v1098_v41, 2  ;;  %v490_v48 = vcvt.s32.f32 %v488_v46  ;;  %v489_v60 = vcvt.s32.f32 %v487_v58 }
 0x2da   :  { %v501_v49 = vsel %vm451_vm3, %v485_v47, 2147483647 }
 0x2db   :  { %491 = vmin.xlane.f32.xlu0 %v490_v48  ;;  %v503_v50 = vshra.s32 %v501_v49, 16  ;;  %v502_v61 = vand.u32 65535, %v501_v49 }
 0x2dd   :  { %v505_v51 = vcvt.s32.f32 %v503_v50  ;;  %v504_v1 = vcvt.s32.f32 %v502_v61 }
 0x2df   :  { %506 = vmin.xlane.f32.xlu1 %v505_v51 }
 0x364   :  { %v492_v59 = vpop.xlane.xlu0 %491 }
 0x365   :  { %vm493_vm6 = vcmp.eq.f32.partialorder %v490_v48, %v492_v59  ;;  %v498_v21 = vcvt.f32.s32 %v492_v59 }
 0x366   :  { %v494_v62 = vsel %vm493_vm6, %v489_v60, inf }
 0x367   :  { %495 = vmin.xlane.f32.xlu0 %v494_v62 }
 0x368   :  { %v1122_v63 = vpop.xlane.xlu1 %506 }
 0x369   :  { %vm508_vm7 = vcmp.eq.f32.partialorder %v505_v51, %v1122_v63 }
 0x36a   :  { %v509_v2 = vsel %vm508_vm7, %v504_v1, inf }
 0x36b   :  { %510 = vmin.xlane.f32.xlu1 %v509_v2 }
 0x3f0   :  { %v496_v24 = vpop.xlane.xlu0 %495 }
 0x3f1   :  { %857 = shalt.err (!%p854_p1)
}
 0x3f2   :  { %590 = dma.vmem_to_hbm [thread:$0]  %s585_s9, 128, %s1189_s12, [#allocation13], %s940_s23, %s940_s23, %s941_s24   ;;  %v530_v25 = vadd.f32 %v529_v22, %v528_v23  ;;  %v499_v26 = vshll.u32 %v498_v21, 16  ;;  %v513_v27 = vcvt.f32.s32 %v1122_v63  ;;  %v497_v28 = vcvt.f32.s32 %v496_v24 }
 0x3f3   :  { %s866_s28 = scalar_lea.vmem %s573_s25, 128  ;;  %p871_p3 = scmp.lt.s32.totalorder %s573_s25, %s573_s25 }
 0x3f4   :  { %p867_p2 = scmp.ne.s32.totalorder %s573_s25, %s866_s28  ;;  %p872_p4 = scmp.lt.s32.totalorder %s866_s28, %s866_s28 }
 0x3f6   :  { %p873_p5 = por %p872_p4, %p871_p3 }
 0x3f8   :  { %p874_p6 = pnand %p873_p5, %p867_p2 }
 0x3fa   :  { %877 = shalt.err (!%p874_p6)
}
 0x3fb   :  { %578 = dma.vmem_to_hbm [thread:$0]  %s573_s25, 128, %s1188_s11, [#allocation4], %s940_s23, %s940_s23, %s941_s24   ;;  %v500_v29 = vadd.s32 %v499_v26, %v497_v28  ;;  %v511_v30 = vpop.xlane.xlu1 %510  ;;  %v531_v31 = vrot.slane %v530_v25, 4  ;;  %v514_v32 = vshll.u32 %v513_v27, 16 }
 0x3fc   :  { %s949_s12 = smov [#allocation14]   ;;  %v512_v33 = vcvt.f32.s32 %v511_v30 }
 0x3fd   :  { %s596_s29 = sshll.u32 %s949_s12, 4  ;;  %vm516_vm8 = vcmp.eq.s32.totalorder %v1098_v41, %v500_v29  ;;  %s597_s29 = int_to_ptr.vmem [resolvable:$true] %s596_s29 }
 0x3fe   :  { %s886_s30 = scalar_lea.vmem %s597_s29, 128  ;;  %p891_p8 = scmp.lt.s32.totalorder %s597_s29, %s597_s29 }
 0x3ff   :  { %p887_p7 = scmp.ne.s32.totalorder %s597_s29, %s886_s30  ;;  %p892_p9 = scmp.lt.s32.totalorder %s886_s30, %s886_s30 }
 0x401   :  { %p893_p10 = por %p892_p9, %p891_p8 }
 0x403   :  { %p894_p11 = pnand %p893_p10, %p887_p7 }
 0x405   :  { %897 = shalt.err (!%p894_p11)
}
 0x406   :  { %602 = dma.vmem_to_hbm [thread:$0]  %s597_s29, 128, %s1190_s13, [#allocation13], %s940_s23, %s940_s23, %s941_s24   ;;  %v660_v34 = vsel %vm516_vm8, 1.0, %v945_v0  ;;  %v515_v36 = vadd.s32 %v514_v32, %v512_v33  ;;  %v532_v39 = vadd.f32 %v531_v31, %v530_v25  ;;  %vm548_vm10 = vcmask 1040384  }
 0x407   :  { %v552_v37 = vmul.f32 %v660_v34, %v1090_v35  ;;  %s950_s17 = smov 2   ;;  %v539_v42 = vsel %vm451_vm3, %v660_v34, 0.0  ;;  %s951_s13 = smov [#allocation15]   ;;  %vm550_vm11 = vcmask 9216  }
 0x408   :  { %vm517_vm9 = vcmp.eq.s32.totalorder %v1098_v41, %v515_v36  ;;  %v533_v46 = vrot.slane %v532_v39, 2  ;;  %s611_s23 = sshll.u32 %s951_s13, 4  ;;  %s612_s23 = int_to_ptr.vmem [resolvable:$true] %s611_s23 }
 0x409   :  { %556 = vrot.lane.b32.xlu0 %v552_v37, %s950_s17  ;;  %v661_v40 = vsel %vm517_vm9, 1.0, %v945_v0  ;;  %s906_s24 = scalar_lea.vmem %s612_s23, 32  ;;  %p911_p13 = scmp.lt.s32.totalorder %s612_s23, %s612_s23 }
 0x40a   :  { %v553_v43 = vmul.f32 %v661_v40, %v1094_v38  ;;  %v540_v44 = vsel %vm451_vm3, %v661_v40, 0.0  ;;  %v534_v49 = vadd.f32 %v533_v46, %v532_v39  ;;  %p907_p12 = scmp.ne.s32.totalorder %s612_s23, %s906_s24  ;;  %p912_p0 = scmp.lt.s32.totalorder %s906_s24, %s906_s24 }
 0x40b   :  { %v541_v45 = vadd.f32 %v540_v44, %v539_v42 }
 0x40c   :  { %558 = vrot.lane.b32.xlu1 %v553_v43, %s950_s17  ;;  %v535_v50 = vrot.slane %v534_v49, 1  ;;  %p913_p1 = por %p912_p0, %p911_p13 }
 0x40d   :  { %v542_v47 = vrot.slane %v541_v45, 4 }
 0x40e   :  { %v536_v0 = vadd.f32 %v535_v50, %v534_v49  ;;  %p914_p2 = pnand %p913_p1, %p907_p12 }
 0x40f   :  { %v543_v48 = vadd.f32 %v542_v47, %v541_v45 }
 0x411   :  { %v544_v35 = vrot.slane %v543_v48, 2 }
 0x413   :  { %v545_v51 = vadd.f32 %v544_v35, %v543_v48 }
 0x415   :  { %v546_v41 = vrot.slane %v545_v51, 1 }
 0x417   :  { %v547_v52 = vadd.f32 %v546_v41, %v545_v51 }
 0x419   :  { %v549_v38 = vsel %vm548_vm10, %v536_v0, %v547_v52 }
 0x41a   :  { %551 = vst.msk [vmem:[#allocation15] sm:$0x3] %vm550_vm11, %v549_v38 }
 0x41b   :  { %917 = shalt.err (!%p914_p2)
}
 0x41c   :  { %614 = dma.vmem_to_hbm [thread:$0]  %s612_s23, 32, %s1192_s15, [#allocation16]   ;;  %vm564_vm12 = vcmask 31744  }
 0x47b   :  { %v557_v53 = vpop.permute.xlu0 %556 }
 0x47c   :  { %v562_v54 = vsel %vm451_vm3, 1.0, %v557_v53 }
 0x47d   :  { %565 = vst.msk [vmem:[%s1191_s14] sm:$0xff] %vm564_vm12, %v562_v54 }
 0x47e   :  { %v559_v55 = vpop.permute.xlu1 %558 }
 0x47f   :  { %v563_v56 = vsel %vm451_vm3, 1.0, %v559_v55 }
 0x480   :  { %566 = vst.msk [vmem:[%s1191_s14 + $0x8] sm:$0xff] %vm564_vm12, %v563_v56 }
 0x481   :  { %932 = dma.done.wait [#allocation4], 128  }
 0x482   :  { %933 = vsyncadd [#allocation4], 4294967168 }
 0x483   :  { %934 = dma.done.wait [#allocation13], 256  }
 0x484   :  { %935 = vsyncadd [#allocation13], 4294967040 }
 0x485   :  { %936 = dma.done.wait [#allocation16], 32  }
 0x486   :  { %937 = vsyncadd [#allocation16], 4294967264 }
 0x487   :  { %629 = vsyncpa [#allocation3], 1 }
 0x488   :  { %630 = vsyncpa [#allocation6], 1 }
 0x489   :  { %631 = vsyncpa [#allocation9], 1 }
 0x48a   :  { %632 = vsyncpa [#allocation4], 1 }
 0x48b   :  { %633 = vsyncpa [#allocation13], 1 }
 0x48c   :  { %634 = vsyncpa [#allocation16], 1 }

</bundles_post_ra>
